<compile_context>
chip_gen: v5e
topology: v5e:2x2
jax: 0.10.0
libtpu: 0.0.40
codegen_flags: <defaults>
</compile_context>

<pallas_src>
import functools

import jax
import jax.numpy as jnp
from jax import lax
from jax.experimental import pallas as pl
from jax.experimental.pallas import tpu as pltpu

_EPS = 1e-8
_LANE = 128


def _round_up(v, m):
    return ((v + m - 1) // m) * m


def _tm_cap():
    # 2*tm rows feed the MXU: 128 rows on v5e (4x128x128 MXU, 1 vst slot),
    # 256 rows on v6e/v7x (2x256x256 MXU).
    try:
        kind = jax.devices()[0].device_kind.lower()
    except Exception:
        return 128
    if "v5e" in kind or "v5 lite" in kind or "v5lite" in kind:
        return 64
    return 128


# --------------------------- prep kernel (weights) ---------------------------
# Runs ONCE at build time over the flat packed weight buffer.

def _nac_prep_kernel(w_hat_ref, m_hat_ref, w_ref):
    w_ref[...] = jnp.tanh(w_hat_ref[...]) * jax.nn.sigmoid(m_hat_ref[...])


def _nac_prep(w_hat_flat, m_hat_flat):
    rows, cols = w_hat_flat.shape          # rows is a multiple of 128
    tr = 256 if rows % 256 == 0 else 128
    return pl.pallas_call(
        _nac_prep_kernel,
        out_shape=jax.ShapeDtypeStruct((rows, cols), jnp.float32),
        grid=(rows // tr,),
        in_specs=[
            pl.BlockSpec((tr, cols), lambda i: (i, 0)),
            pl.BlockSpec((tr, cols), lambda i: (i, 0)),
        ],
        out_specs=pl.BlockSpec((tr, cols), lambda i: (i, 0)),
        compiler_params=pltpu.CompilerParams(
            dimension_semantics=("parallel",)),
    )(w_hat_flat, m_hat_flat)


# --------------------------- fused stack kernel -------------------------------

def _stacked_snalu_kernel(g_ref, w_ref, x_ref, o_ref, *,
                          layer_meta, tm, use_bf16_mxu):
    # Activation stays resident in vregs/VMEM across the whole (unrolled) stack.
    h = x_ref[...].astype(jnp.float32)

    for l, (row_off, d_in, d_out, din_pad, dout_pad) in enumerate(layer_meta):
        # Static, lane/sublane-aligned slice of the packed resident weights.
        W = w_ref[row_off:row_off + din_pad, 0:dout_pad]   # (din_pad, dout_pad)
        g = g_ref[l]                                       # sigmoid(G), SMEM scalar

        logh = jnp.log(jnp.abs(h) + _EPS)

        if use_bf16_mxu:
            # Additive path in bf16 (native MXU dtype); log path stays f32 so
            # exp() does not amplify bf16 matmul rounding.
            # TODO(synk): hoist the bf16 weight cast into build_stacked_snalu.
            a = jnp.dot(h.astype(jnp.bfloat16), W.astype(jnp.bfloat16),
                        preferred_element_type=jnp.float32)
            mlog = jnp.dot(logh, W, preferred_element_type=jnp.float32)
        else:
            # Single MXU pass for both paths: [h ; log(|h|+eps)] @ W.
            xx = jnp.concatenate([h, logh], axis=0)                   # (2*tm, din_pad)
            yy = jnp.dot(xx, W, preferred_element_type=jnp.float32)   # (2*tm, dout_pad)
            a, mlog = yy[:tm], yy[tm:]

        m = jnp.exp(mlog)

        # sign(x).prod over the true d_in features only (padded lanes -> +1).
        # Cross-lane XLU reduce; shares the vector-extended slots with the MXU
        # pushes -- measured as free filler at these sizes, revisit if the
        # bundle dump shows that slot saturated.
        col_in = lax.broadcasted_iota(jnp.int32, (1, din_pad), 1)
        sgn = jnp.where(col_in < d_in, jnp.sign(h), 1.0)
        sign_prod = jnp.prod(sgn, axis=1, keepdims=True)

        y = g * a + (1.0 - g) * sign_prod * m

        # Zero the padded output lanes so the next layer sees clean padding
        # (padded lanes otherwise carry (1-g)*sign_prod*exp(0)).
        col_out = lax.broadcasted_iota(jnp.int32, (1, dout_pad), 1)
        h = jnp.where(col_out < d_out, y, 0.0)

    o_ref[...] = h.astype(o_ref.dtype)


# ------------------------------ build + apply ---------------------------------

def build_stacked_snalu(params, *, use_bf16_mxu=False):
    """One-time prep: pad/pack weights, run the prep kernel, return a jitted
    forward function.  params: list of (W_hat, M_hat, G)."""
    n_layers = len(params)
    layer_dims = tuple((int(w.shape[0]), int(w.shape[1])) for (w, _, _) in params)

    # Per-layer padded shapes; pack all layers row-wise into one flat buffer.
    row_offs, off = [], 0
    for d_in, _ in layer_dims:
        row_offs.append(off)
        off += _round_up(d_in, _LANE)
    total_rows = off
    dout_max_pad = max(_round_up(d_out, _LANE) for _, d_out in layer_dims)

    w_hat_flat = jnp.zeros((total_rows, dout_max_pad), jnp.float32)
    m_hat_flat = jnp.zeros((total_rows, dout_max_pad), jnp.float32)
    g_list = []
    layer_meta = []
    for l, (w_hat, m_hat, g) in enumerate(params):
        d_in, d_out = layer_dims[l]
        r0 = row_offs[l]
        w_hat_flat = w_hat_flat.at[r0:r0 + d_in, :d_out].set(
            w_hat.astype(jnp.float32))
        m_hat_flat = m_hat_flat.at[r0:r0 + d_in, :d_out].set(
            m_hat.astype(jnp.float32))
        g_list.append(jnp.reshape(g, (-1,))[:1].astype(jnp.float32))
        layer_meta.append(
            (r0, d_in, d_out, _round_up(d_in, _LANE), _round_up(d_out, _LANE)))
    layer_meta = tuple(layer_meta)

    # Gate sigmoids: L scalars, plain JAX, stored flat for SMEM.
    g_sig = jax.nn.sigmoid(jnp.concatenate(g_list))            # (L,)
    # Effective NAC weights (EUP transcendentals, done exactly once).
    w_flat = _nac_prep(w_hat_flat, m_hat_flat)                 # (total_rows, dout_max_pad)

    in_dim = layer_dims[0][0]
    out_dim = layer_dims[-1][1]
    din0_pad = layer_meta[0][3]
    doutL_pad = layer_meta[-1][4]
    tm_cap = _tm_cap()

    @jax.jit
    def apply(x):
        batch = x.shape[0]
        assert x.shape[1] == in_dim, "input feature dim mismatch"
        tm = min(_round_up(batch, 8), tm_cap)
        b_pad = _round_up(batch, tm)

        # Pad input: batch to the tile, features to the layer-0 padded width.
        x_pad = jnp.zeros((b_pad, din0_pad), jnp.float32)
        x_pad = x_pad.at[:batch, :in_dim].set(x.astype(jnp.float32))

        kernel = functools.partial(
            _stacked_snalu_kernel, layer_meta=layer_meta, tm=tm,
            use_bf16_mxu=use_bf16_mxu)

        # VMEM budget: resident weights (1x) + double-buffered I/O + working set.
        weight_bytes = total_rows * dout_max_pad * 4
        io_bytes = 2 * tm * (din0_pad + doutL_pad) * 4
        work_bytes = 8 * tm * max(din0_pad, dout_max_pad) * 4
        vmem_limit = int(min(max(2 * (weight_bytes + io_bytes + work_bytes),
                                 16 * 2**20),
                             64 * 2**20))   # stay within v7x per-TC physical

        flops = sum(2 * (2 * b_pad) * dip * dop
                    for (_, _, _, dip, dop) in layer_meta)
        transcendentals = sum(b_pad * (dip + dop)
                              for (_, _, _, dip, dop) in layer_meta)
        bytes_accessed = ((b_pad * din0_pad + b_pad * doutL_pad) * 4
                          + weight_bytes + 4 * n_layers)

        out_pad = pl.pallas_call(
            kernel,
            out_shape=jax.ShapeDtypeStruct((b_pad, doutL_pad), jnp.float32),
            grid=(b_pad // tm,),
            in_specs=[
                # Gates: flat (L,) SMEM scalars.
                pl.BlockSpec(memory_space=pltpu.MemorySpace.SMEM),
                # Packed weights: whole array resident in VMEM, single buffer.
                pl.BlockSpec(memory_space=pltpu.MemorySpace.VMEM),
                # Batch-tiled, lane-dense input.
                pl.BlockSpec((tm, din0_pad), lambda i: (i, 0)),
            ],
            out_specs=pl.BlockSpec((tm, doutL_pad), lambda i: (i, 0)),
            compiler_params=pltpu.CompilerParams(
                dimension_semantics=("parallel",),
                vmem_limit_bytes=vmem_limit),
            cost_estimate=pl.CostEstimate(
                flops=flops,
                transcendentals=transcendentals,
                bytes_accessed=bytes_accessed),
        )(g_sig, w_flat, x_pad)

        return out_pad[:batch, :out_dim]

    return apply


def stacked_snalu(x, params):
    """Convenience one-shot API (prefer build_stacked_snalu + reuse)."""
    return build_stacked_snalu(params)(x)


# ----------------------- parameter init (deterministic) ----------------------

def xavier_uniform(key, shape):
    fan_in, fan_out = shape
    bound = jnp.sqrt(6.0 / (fan_in + fan_out))
    return jax.random.uniform(key, shape, jnp.float32, -bound, bound)


def init_stacked_snalu(key, n_layers, in_dim, out_dim, hidden_dim):
    params = []
    for i in range(n_layers):
        d_in = in_dim if i == 0 else hidden_dim
        d_out = out_dim if i == n_layers - 1 else hidden_dim
        key, k_w, k_m, k_g = jax.random.split(key, 4)
        w_hat = xavier_uniform(k_w, (d_in, d_out))
        m_hat = xavier_uniform(k_m, (d_in, d_out))
        g = xavier_uniform(k_g, (1, 1))
        params.append((w_hat, m_hat, g))
    return params


# ----------------------------- pure-JAX reference ----------------------------

def _snalu_ref(x, w_hat, m_hat, g):
    W = jnp.tanh(w_hat) * jax.nn.sigmoid(m_hat)
    gg = jax.nn.sigmoid(g)  # (1,1), broadcasts
    a = x @ W
    m = jnp.exp(jnp.log(jnp.abs(x) + _EPS) @ W)
    sm = jnp.prod(jnp.sign(x), axis=1, keepdims=True) * m
    return gg * a + (1.0 - gg) * sm


def stacked_snalu_ref(x, params):
    h = x
    for (w_hat, m_hat, g) in params:
        h = _snalu_ref(h, w_hat, m_hat, g)
    return h


if __name__ == "__main__":
    n_layers, in_dim, hidden_dim, out_dim = 3, 16, 32, 8
    batch = 8

    key = jax.random.PRNGKey(0)
    key, kx = jax.random.split(key)
    x = jax.random.normal(kx, (batch, in_dim), jnp.float32)

    params = init_stacked_snalu(key, n_layers, in_dim, out_dim, hidden_dim)

    # Build once (weight prep hoisted + cached), call many times.
    fwd = build_stacked_snalu(params)
    y = fwd(x)
    y = jax.block_until_ready(y)

    y_ref = stacked_snalu_ref(x, params)
    assert y.shape == (batch, out_dim)
    max_err = jnp.max(jnp.abs(y - y_ref))
    assert jnp.allclose(y, y_ref, rtol=1e-4, atol=1e-4), (
        f"mismatch: max abs err {max_err}")

    print("KERNEL_OK")
</pallas_src>

<mosaic_0001>
module attributes {stable_mosaic.version = 11 : i64} {
  func.func @_nac_prep_kernel(%arg0: i32, %arg1: memref<128x128xf32, #tpu.memory_space<vmem>>, %arg2: memref<128x128xf32, #tpu.memory_space<vmem>>, %arg3: memref<128x128xf32, #tpu.memory_space<vmem>>) attributes {dimension_semantics = [#tpu.dimension_semantics<parallel>], iteration_bounds = array<i64: 3>, scalar_prefetch = 0 : i64, scratch_operands = 0 : i64, tpu.core_type = #tpu.core_type<tc>, window_params = [{transform_indices = @transform_0, window_bounds = array<i64: 128, 128>}, {transform_indices = @transform_1, window_bounds = array<i64: 128, 128>}, {transform_indices = @transform_2, window_bounds = array<i64: 128, 128>}]} {
    %c0 = arith.constant 0 : index
    %c0_0 = arith.constant 0 : index
    %0 = vector.load %arg1[%c0, %c0_0] : memref<128x128xf32, #tpu.memory_space<vmem>>, vector<128x128xf32>
    %1 = math.tanh %0 : vector<128x128xf32>
    %c0_1 = arith.constant 0 : index
    %c0_2 = arith.constant 0 : index
    %2 = vector.load %arg2[%c0_1, %c0_2] : memref<128x128xf32, #tpu.memory_space<vmem>>, vector<128x128xf32>
    %3 = arith.negf %2 : vector<128x128xf32>
    %4 = math.exp %3 : vector<128x128xf32>
    %cst = arith.constant 1.000000e+00 : f32
    %5 = vector.broadcast %cst : f32 to vector<128x128xf32>
    %6 = arith.addf %5, %4 : vector<128x128xf32>
    %7 = arith.divf %5, %6 : vector<128x128xf32>
    %8 = arith.mulf %1, %7 : vector<128x128xf32>
    %c0_3 = arith.constant 0 : index
    %c0_4 = arith.constant 0 : index
    %9 = vector.load %arg3[%c0_3, %c0_4] : memref<128x128xf32, #tpu.memory_space<vmem>>, vector<128x128xf32>
    tpu.vector_store %arg3[%c0_3, %c0_4], %8 {strides = array<i32>} : memref<128x128xf32, #tpu.memory_space<vmem>>, vector<128x128xf32>,
    return
  }
  func.func @transform_0(%arg0: i32) -> (i32, i32) {
    %c0_i32 = arith.constant 0 : i32
    %c0_i32_0 = arith.constant 0 : i32
    return %arg0, %c0_i32 : i32, i32
  }
  func.func @transform_1(%arg0: i32) -> (i32, i32) {
    %c0_i32 = arith.constant 0 : i32
    %c0_i32_0 = arith.constant 0 : i32
    return %arg0, %c0_i32 : i32, i32
  }
  func.func @transform_2(%arg0: i32) -> (i32, i32) {
    %c0_i32 = arith.constant 0 : i32
    %c0_i32_0 = arith.constant 0 : i32
    return %arg0, %c0_i32 : i32, i32
  }
}

</mosaic_0001>

<bundles_post_ra>
// kernel: tpu_custom_call.1
= control target key start
LH: loop header
LB: loop body
LE: loop exit
PB: predicated region body
PF: predicated region fallthrough
CT: control target
= control target key end

     0   :  { %7 = vsyncpa [#allocation3], 0  ;;  %s1589_s0 = inlined_call_operand.hbm [shape: f32[384,128], index: 0, kind: input, shape index: {}]   ;;  %s1590_s1 = inlined_call_operand.hbm [shape: f32[384,128], index: 1, kind: input, shape index: {}]   ;;  %s1591_s2 = inlined_call_operand.hbm [shape: f32[384,128], index: 2, kind: output, shape index: {}]  }
   0x1   :  { %9 = vsyncpa [#allocation3 + $0x1], 0 }
   0x2   :  { %10 = vsyncpa [#allocation6], 0 }
   0x3   :  { %12 = vsyncpa [#allocation6 + $0x1], 0 }
   0x4   :  { %13 = vsyncpa [#allocation4], 0 }
   0x5   :  { %15 = vsyncpa [#allocation4 + $0x1], 0  ;;  %s1044_s9 = smov 0   ;;  %s1046_s10 = smov 0  }
   0x6   :  { %s1048_s11 = smov 0   ;;  %s1050_s12 = smov 0  }
   0x7 LB: > { %s1065_s13 = sadd.s32 4294967295, %s1023_s12   ;;  %s705_s14 = sadd.s32 4294967294, %s1023_s12   ;;  %s1023_s12 = sphi %s1050_s12, %s1647_s12   ;;  %s1019_s11 = sphi %s1048_s11, %s1646_s11   ;;  %s1015_s10 = sphi %s1046_s10, %s1645_s10   ;;  %s1011_s9 = sphi %s1044_s9, %s1644_s9  }
   0x8   : > { %s1069_s15 = sadd.s32 1, %s1023_s12   ;;  %s28_s16 = sadd.s32 1, %s1019_s11 }
   0x9   : > { %s25_s17 = ssub.s32 %s1023_s12, %s1069_s15  ;;  %p35_p0 = scmp.ne.s32.totalorder %s1019_s11, %s1015_s10 }
   0xa   : > { %p26_p1 = scmp.eq.s32.totalorder %s25_s17, 0  ;;  %p36_p2 = scmp.eq.s32.totalorder %s1023_s12, 0 }
   0xb   : > { %p41_p3 = scmp.ne.s32.totalorder %s1015_s10, %s1011_s9  ;;  %p42_p4 = scmp.eq.s32.totalorder %s1065_s13, 0 }
   0xc   : > { %s1081_s18 = scalar_select %p26_p1, %s1019_s11, %s28_s16  }
   0xd   : > { %p1083_p5 = por %p36_p2, %p35_p0  ;;  %p1087_p6 = por %p42_p4, %p41_p3 }
   0xe   : > { %p91_p7 = scmp.eq.s32.totalorder %s1065_s13, 2  ;;  %p97_p8 = scmp.eq.s32.totalorder %s705_s14, 2 }
   0xf   : > { %p759_p9 = scmp.lt.s32.totalorder %s1023_s12, 3  ;;  %s1102_s23 = sand.u32 1, %s1019_s11  }
  0x10   : > { %p1093_p10 = por %p91_p7, %p35_p0  ;;  %p1097_p11 = por %p97_p8, %p41_p3 }
  0x11   : > { %s739_s24 = sshll.u32 %s1023_s12, 7  ;;  %s708_s25 = sshll.u32 %s1102_s23, 7 }
  0x12   : > { %s126_s28 = scalar_lea.hbm %s1589_s0, %s739_s24  ;;  %s121_s30 = scalar_lea.vmem [#allocation2], %s708_s25 }
  0x13   : > { %s127_s29 = sshll.u32 %s126_s28, 4  ;;  %s129_s3 = sshll.u32 %s121_s30, 4  ;;  %s128_s29 = int_to_ptr.hbm [resolvable:$true] %s127_s29  ;;  %s130_s3 = int_to_ptr.vmem [resolvable:$true] %s129_s3 }
  0x14   : > { %p1115_p12 = pnand %p759_p9, %p1083_p5  ;;  %p714_p13 = scmp.ge.s32.totalorder %s1023_s12, 1 }
  0x15   : > { %p159_p0 = scmp.lt.s32.totalorder %s1023_s12, 4  ;;  %s118_s5 = scalar_lea.sflag [#allocation3], %s1102_s23 }
  0x16   : > { %s893_s6 = sshra.s32 %s128_s29, 4  ;;  %p897_p2 = pneg %p1115_p12  ;;  %s894_s6 = int_to_ptr.hbm [resolvable:$true] %s893_s6 }
  0x17   : > { %s895_s7 = scalar_lea.hbm %s894_s6, 128  ;;  %s900_s16 = scalar_lea.hbm %s1589_s0, 384 }
  0x18   : > { %p896_p1 = scmp.ne.s32.totalorder %s894_s6, %s895_s7  ;;  %p901_p5 = scmp.lt.s32.totalorder %s894_s6, %s1589_s0 }
  0x19   : > { %p902_p7 = scmp.lt.s32.totalorder %s900_s16, %s895_s7 }
  0x1a   : > { %p898_p3 = pnand %p897_p2, %p896_p1 }
  0x1b   : > { %p903_p8 = por %p902_p7, %p901_p5 }
  0x1c   : > { %p899_p4 = pneg %p898_p3 }
  0x1e   : > { %p904_p9 = pnand %p903_p8, %p899_p4 }
  0x20   : > { %907 = shalt.err (!%p904_p9)
}
  0x21   : > { %s1025_s26 = smov 128   ;;  %s1026_s27 = smov 8  }
  0x22   : > { %751 = dma.hbm_to_vmem [thread:$0]  (!%p1115_p12), %s128_s29, 2048, %s130_s3, %s118_s5, %s1025_s26, %s1025_s26, %s1026_s27  }
  0x23   : > { %p1139_p1 = pnand %p714_p13, %p159_p0  ;;  %s148_s7 = scalar_lea.hbm %s1590_s1, %s739_s24 }
  0x24   : > { %s149_s8 = sshll.u32 %s148_s7, 4  ;;  %s143_s14 = scalar_lea.vmem [#allocation5], %s708_s25  ;;  %s150_s8 = int_to_ptr.hbm [resolvable:$true] %s149_s8 }
  0x25   : > { %s151_s16 = sshll.u32 %s143_s14, 4  ;;  %s140_s17 = scalar_lea.sflag [#allocation6], %s1102_s23  ;;  %s152_s16 = int_to_ptr.vmem [resolvable:$true] %s151_s16 }
  0x26   : > { %s923_s19 = sshra.s32 %s150_s8, 4  ;;  %s930_s30 = scalar_lea.hbm %s1590_s1, 384  ;;  %s924_s19 = int_to_ptr.hbm [resolvable:$true] %s923_s19 }
  0x27   : > { %s925_s29 = scalar_lea.hbm %s924_s19, 128  ;;  %p931_p4 = scmp.lt.s32.totalorder %s924_s19, %s1590_s1 }
  0x28   : > { %p926_p3 = scmp.ne.s32.totalorder %s924_s19, %s925_s29  ;;  %p932_p5 = scmp.lt.s32.totalorder %s930_s30, %s925_s29 }
  0x2a   : > { %p928_p13 = pnand %p926_p3, %p897_p2  ;;  %p933_p7 = por %p932_p5, %p931_p4 }
  0x2c   : > { %p929_p0 = pneg %p928_p13 }
  0x2e   : > { %p934_p8 = pnand %p933_p7, %p929_p0 }
  0x30   : > { %937 = shalt.err (!%p934_p8)
}
  0x31   : > { %754 = dma.hbm_to_vmem [thread:$0]  (!%p1115_p12), %s150_s8, 2048, %s152_s16, %s140_s17, %s1025_s26, %s1025_s26, %s1026_s27  }
  0x32   : > { %163 = sbr.rel (%p1139_p1) target bundleno = 153 (0x99), region = 28  ;;  %s1165_s23 = sand.u32 (!%p1139_p1), 1, %s1015_s10  }
  0x33   : > { %s1168_s25 = sshll.u32 (!%p1139_p1), %s1165_s23, 7  ;;  %s166_s7 = scalar_lea.sflag (!%p1139_p1), [#allocation3], %s1165_s23 }
  0x34   : > { %s1172_s14 = scalar_lea.vmem (!%p1139_p1), [#allocation2], %s1168_s25 }
  0x37   : > { %998 = dma.done.wait (%p1087_p6), %s166_s7, 2048  }
  0x38   : > { %1000 = vsyncadd (%p1087_p6), %s166_s7, 4294965248  ;;  %s176_s4 = scalar_lea.sflag [#allocation6], %s1165_s23  ;;  %s1180_s26 = scalar_lea.vmem [#allocation5], %s1168_s25 }
  0x39   : > { %1002 = dma.done.wait (%p1087_p6), %s176_s4, 2048  }
  0x3a   : > { %1004 = vsyncadd (%p1087_p6), %s176_s4, 4294965248  ;;  %v209_v0 = vld [vmem:[%s1172_s14] sm:$0xff]  ;;  %v242_v3 = vld [vmem:[%s1180_s26 + $0x8] sm:$0xff]  ;;  %s1316_s20 = scalar_lea.vmem [#allocation7], %s1168_s25  ;;  %s741_s27 = sshll.u32 %s1065_s13, 7 }
  0x3b   : > { %v241_v1 = vld [vmem:[%s1180_s26] sm:$0xff]  ;;  %v243_v4 = vld [vmem:[%s1180_s26 + $0x10] sm:$0xff]  ;;  %797 = vtanh.f32 %v209_v0  ;;  %v210_v5 = vld [vmem:[%s1172_s14 + $0x8] sm:$0xff]  ;;  %v719_v6 = vmul.f32 -1.442695, %v242_v3  ;;  %s605_s16 = scalar_lea.hbm %s1591_s2, %s741_s27  ;;  %s606_s13 = sshll.u32 %s1316_s20, 4  ;;  %s607_s13 = int_to_ptr.vmem [resolvable:$true] %s606_s13 }
  0x3c   : > { %v718_v2 = vmul.f32 -1.442695, %v241_v1  ;;  %v720_v7 = vmul.f32 -1.442695, %v243_v4  ;;  %v244_v8 = vld [vmem:[%s1180_s26 + $0x18] sm:$0xff]  ;;  %v245_v9 = vld [vmem:[%s1180_s26 + $0x20] sm:$0xff] }
  0x3d   : > { %v211_v10 = vld [vmem:[%s1172_s14 + $0x10] sm:$0xff]  ;;  %v721_v11 = vmul.f32 -1.442695, %v244_v8  ;;  %v212_v12 = vld [vmem:[%s1172_s14 + $0x18] sm:$0xff]  ;;  %v722_v13 = vmul.f32 -1.442695, %v245_v9 }
  0x3e   : > { %799 = vpow2.f32 %v718_v2  ;;  %v246_v14 = vld [vmem:[%s1180_s26 + $0x28] sm:$0xff]  ;;  %v213_v16 = vld [vmem:[%s1172_s14 + $0x20] sm:$0xff]  ;;  %v247_v23 = vld [vmem:[%s1180_s26 + $0x30] sm:$0xff]  ;;  %s608_s17 = sshll.u32 %s605_s16, 4  ;;  %s594_s19 = scalar_lea.sflag [#allocation4], %s1165_s23  ;;  %s609_s17 = int_to_ptr.hbm [resolvable:$true] %s608_s17 }
  0x3f   : > { %801 = vpow2.f32 %v719_v6  ;;  %v723_v20 = vmul.f32 -1.442695, %v246_v14  ;;  %v214_v25 = vld [vmem:[%s1172_s14 + $0x28] sm:$0xff]  ;;  %v248_v26 = vld [vmem:[%s1180_s26 + $0x38] sm:$0xff]  ;;  %v249_v30 = vld [vmem:[%s1180_s26 + $0x40] sm:$0xff]  ;;  %s967_s29 = sshra.s32 %s609_s17, 4  ;;  %s968_s29 = int_to_ptr.hbm [resolvable:$true] %s967_s29 }
  0x40   : > { %803 = vtanh.f32 %v210_v5  ;;  %v250_v31 = vld [vmem:[%s1180_s26 + $0x48] sm:$0xff]  ;;  %v724_v35 = vmul.f32 -1.442695, %v247_v23  ;;  %v1224_v39 = vmul.f32 -1.442695, %v248_v26  ;;  %v217_v4 = vld [vmem:[%s1172_s14 + $0x40] sm:$0xff]  ;;  %p974_p9 = scmp.lt.s32.totalorder %s968_s29, %s1591_s2 }
  0x41   : > { %805 = vpow2.f32 %v720_v7  ;;  %v1196_v15 = vpop.eup %797  ;;  %v1228_v41 = vmul.f32 -1.442695, %v249_v30  ;;  %v1230_v42 = vmul.f32 -1.442695, %v250_v31  ;;  %v218_v6 = vld [vmem:[%s1172_s14 + $0x48] sm:$0xff]  ;;  %s969_s3 = scalar_lea.hbm %s968_s29, 128 }
  0x42   : > { %807 = vtanh.f32 %v211_v10  ;;  %p970_p6 = scmp.ne.s32.totalorder %s968_s29, %s969_s3  ;;  %s973_s24 = scalar_lea.hbm %s1591_s2, 384 }
  0x43   : > { %809 = vpow2.f32 %v721_v11  ;;  %p975_p1 = scmp.lt.s32.totalorder %s973_s24, %s969_s3 }
  0x44   : > { %v800_v17 = vpop.eup %799  ;;  %811 = vtanh.f32 %v212_v12  ;;  %p971_p12 = pnand %p970_p6, %p1093_p10 }
  0x45   : > { %v802_v18 = vpop.eup %801  ;;  %v1199_v19 = vadd.f32 1.0, %v800_v17  ;;  %813 = vpow2.f32 %v722_v13  ;;  %p976_p3 = por %p975_p1, %p974_p9 }
  0x46   : > { %v1201_v21 = vpop.eup %803  ;;  %v1203_v22 = vadd.f32 1.0, %v802_v18  ;;  %815 = vtanh.f32 %v213_v16  ;;  %p972_p2 = pneg %p971_p12 }
  0x47   : > { %v806_v24 = vpop.eup %805  ;;  %817 = vrcp.f32 %v1199_v19  ;;  %v330_v28 = vand.u32 2147483647, %v1199_v19  ;;  %v332_v29 = vand.u32 2147483648, %v1199_v19  ;;  %vm326_vm0 = vweird.f32 %v1199_v19 }
  0x48   : > { %v1209_v27 = vpop.eup %807  ;;  %819 = vrcp.f32 %v1203_v22  ;;  %v345_v33 = vand.u32 2147483647, %v1203_v22  ;;  %v1217_v34 = vadd.f32 1.0, %v806_v24  ;;  %v347_v37 = vand.u32 2147483648, %v1203_v22  ;;  %p977_p13 = pnand %p976_p3, %p972_p2 }
  0x49   : > { %v810_v32 = vpop.eup %809  ;;  %821 = vpow2.f32 %v723_v20  ;;  %vm1234_vm1 = vcmp.eq.f32.partialorder %v330_v28, 8.507059e+37  ;;  %v333_v45 = vor.u32 1.1754944e-38, %v332_v29  ;;  %vm341_vm2 = vweird.f32 %v1203_v22 }
  0x4a   : > { %v1219_v36 = vpop.eup %811  ;;  %v1222_v38 = vadd.f32 1.0, %v810_v32  ;;  %823 = vtanh.f32 %v214_v25  ;;  %vm1240_vm3 = vcmp.eq.f32.partialorder %v345_v33, 8.507059e+37  ;;  %v360_v48 = vand.u32 2147483647, %v1217_v34 }
  0x4b   : > { %v814_v40 = vpop.eup %813  ;;  %825 = vrcp.f32 %v1217_v34  ;;  %v362_v49 = vand.u32 2147483648, %v1217_v34  ;;  %v348_v53 = vor.u32 1.1754944e-38, %v347_v37  ;;  %vm356_vm4 = vweird.f32 %v1217_v34 }
  0x4c   : > { %v1232_v43 = vpop.eup %815  ;;  %827 = vrcp.f32 %v1222_v38  ;;  %v1246_v50 = vadd.f32 1.0, %v814_v40  ;;  %v375_v54 = vand.u32 2147483647, %v1222_v38  ;;  %vm371_vm5 = vweird.f32 %v1222_v38 }
  0x4d   : > { %v818_v46 = vpop.eup %817  ;;  %v377_v57 = vand.u32 2147483648, %v1222_v38  ;;  %vm1259_vm8 = vcmp.eq.f32.partialorder %v360_v48, 8.507059e+37  ;;  %v363_v0 = vor.u32 1.1754944e-38, %v362_v49 }
  0x4e   : > { %v820_v51 = vpop.eup %819  ;;  %v322_v52 = vmul.f32 %v818_v46, %v1199_v19  ;;  %829 = vrcp.f32 %v1246_v50  ;;  %vm327_vm6 = vweird.f32 %v818_v46  ;;  %vm1264_vm9 = vcmp.eq.f32.partialorder %v375_v54, 8.507059e+37  ;;  %v215_v54 = vld [vmem:[%s1172_s14 + $0x30] sm:$0xff] }
  0x4f   : > { %v822_v55 = vpop.eup %821  ;;  %v337_v56 = vmul.f32 %v820_v51, %v1203_v22  ;;  %831 = vpow2.f32 %v724_v35  ;;  %vm342_vm7 = vweird.f32 %v820_v51  ;;  %v390_v5 = vand.u32 2147483647, %v1246_v50  ;;  %vm1271_vm10 = vmor %vm326_vm0, %vm327_vm6 }
  0x50   : > { %v1255_v58 = vpop.eup %823  ;;  %v323_v59 = vsub.f32 1.0, %v322_v52  ;;  %v1257_v60 = vadd.f32 1.0, %v822_v55  ;;  %v378_v9 = vor.u32 1.1754944e-38, %v377_v57  ;;  %vm386_vm11 = vweird.f32 %v1246_v50  ;;  %vm1279_vm12 = vmor %vm341_vm2, %vm342_vm7  ;;  %v251_v55 = vld [vmem:[%s1180_s26 + $0x50] sm:$0xff] }
  0x51   : > { %v826_v61 = vpop.eup %825  ;;  %v338_v62 = vsub.f32 1.0, %v337_v56  ;;  %v392_v17 = vand.u32 2147483648, %v1246_v50  ;;  %vm1288_vm15 = vcmp.eq.f32.partialorder %v390_v5, 8.507059e+37 }
  0x52   : > { %v828_v1 = vpop.eup %827  ;;  %v324_v2 = vmul.f32 %v818_v46, %v323_v59  ;;  %v352_v3 = vmul.f32 %v826_v61, %v1217_v34  ;;  %vm357_vm13 = vweird.f32 %v826_v61  ;;  %833 = vrcp.f32 %v1257_v60  ;;  %v216_v59 = vld [vmem:[%s1172_s14 + $0x38] sm:$0xff] }
  0x53   : > { %v339_v7 = vmul.f32 %v820_v51, %v338_v62  ;;  %v367_v8 = vmul.f32 %v828_v1, %v1222_v38  ;;  %vm372_vm14 = vweird.f32 %v828_v1  ;;  %vm1298_vm0 = vmor %vm356_vm4, %vm357_vm13  ;;  %v393_v37 = vor.u32 1.1754944e-38, %v392_v17  ;;  %v219_v17 = vld [vmem:[%s1172_s14 + $0x50] sm:$0xff] }
  0x54   : > { %v325_v10 = vadd.f32 %v818_v46, %v324_v2  ;;  %v353_v12 = vsub.f32 1.0, %v352_v3  ;;  %v830_v13 = vpop.eup %829  ;;  %835 = vpow2.f32 %v1224_v39  ;;  %v407_v39 = vand.u32 2147483648, %v1257_v60 }
  0x55   : > { %v340_v14 = vadd.f32 %v820_v51, %v339_v7  ;;  %v368_v16 = vsub.f32 1.0, %v367_v8  ;;  %v832_v18 = vpop.eup %831  ;;  %v382_v22 = vmul.f32 %v830_v13, %v1246_v50  ;;  %vm387_vm2 = vweird.f32 %v830_v13 }
  0x56   : > { %v329_v19 = vsel %vm1271_vm10, %v818_v46, %v325_v10  ;;  %v354_v20 = vmul.f32 %v826_v61, %v353_v12  ;;  %v1313_v40 = vadd.f32 1.0, %v832_v18  ;;  %vm1331_vm4 = vmor %vm386_vm11, %vm387_vm2  ;;  %v253_v12 = vld [vmem:[%s1180_s26 + $0x60] sm:$0xff] }
  0x57   : > { %v334_v24 = vsel %vm1234_vm1, %v333_v45, %v329_v19  ;;  %v344_v25 = vsel %vm1279_vm12, %v820_v51, %v340_v14  ;;  %v369_v28 = vmul.f32 %v828_v1, %v368_v16  ;;  %vm1308_vm1 = vmor %vm371_vm5, %vm372_vm14  ;;  %v383_v33 = vsub.f32 1.0, %v382_v22 }
  0x58   : > { %v561_v29 = vmul.f32 %v1196_v15, %v334_v24  ;;  %v349_v30 = vsel %vm1240_vm3, %v348_v53, %v344_v25  ;;  %v355_v31 = vadd.f32 %v826_v61, %v354_v20  ;;  %v834_v44 = vpop.eup %833  ;;  %vm401_vm3 = vweird.f32 %v1257_v60  ;;  %v220_v20 = vld [vmem:[%s1172_s14 + $0x58] sm:$0xff] }
  0x59   : > { %v562_v34 = vmul.f32 %v1201_v21, %v349_v30  ;;  %v370_v35 = vadd.f32 %v828_v1, %v369_v28  ;;  %v384_v38 = vmul.f32 %v830_v13, %v383_v33  ;;  %v397_v47 = vmul.f32 %v834_v44, %v1257_v60 }
  0x5a   : > { %577 = vst [vmem:[%s1316_s20] sm:$0xff] %v561_v29  ;;  %v359_v15 = vsel %vm1298_vm0, %v826_v61, %v355_v31  ;;  %837 = vrcp.f32 %v1313_v40  ;;  %vm402_vm5 = vweird.f32 %v834_v44  ;;  %v405_v53 = vand.u32 2147483647, %v1257_v60  ;;  %v836_v61 = vpop.eup %835 }
  0x5b   : > { %578 = vst [vmem:[%s1316_s20 + $0x8] sm:$0xff] %v562_v34  ;;  %v364_v21 = vsel %vm1259_vm8, %v363_v0, %v359_v15  ;;  %v374_v45 = vsel %vm1308_vm1, %v828_v1, %v370_v35  ;;  %v385_v51 = vadd.f32 %v830_v13, %v384_v38  ;;  %v398_v52 = vsub.f32 1.0, %v397_v47  ;;  %vm1357_vm6 = vmor %vm401_vm3, %vm402_vm5  ;;  %v255_v35 = vld [vmem:[%s1180_s26 + $0x70] sm:$0xff]  ;;  %v221_v47 = vld [vmem:[%s1172_s14 + $0x60] sm:$0xff] }
  0x5c   : > { %v563_v48 = vmul.f32 %v1209_v27, %v364_v21  ;;  %v379_v49 = vsel %vm1264_vm9, %v378_v9, %v374_v45  ;;  %839 = vpow2.f32 %v1228_v41  ;;  %v408_v0 = vor.u32 1.1754944e-38, %v407_v39 }
  0x5d   : > { %v564_v50 = vmul.f32 %v1219_v36, %v379_v49  ;;  %v389_v56 = vsel %vm1331_vm4, %v830_v13, %v385_v51  ;;  %v399_v57 = vmul.f32 %v834_v44, %v398_v52  ;;  %v252_v36 = vld [vmem:[%s1180_s26 + $0x58] sm:$0xff]  ;;  %841 = vtanh.f32 %v215_v54  ;;  %v254_v13 = vld [vmem:[%s1180_s26 + $0x68] sm:$0xff] }
  0x5e   : > { %579 = vst [vmem:[%s1316_s20 + $0x10] sm:$0xff] %v563_v48  ;;  %v394_v27 = vsel %vm1288_vm15, %v393_v37, %v389_v56  ;;  %v728_v1 = vmul.f32 -1.442695, %v251_v55  ;;  %vm406_vm7 = vcmp.eq.f32.partialorder %v405_v53, 8.507059e+37  ;;  %v1361_v3 = vadd.f32 1.0, %v836_v61  ;;  %v256_v37 = vld [vmem:[%s1180_s26 + $0x78] sm:$0xff] }
  0x5f   : > { %580 = vst [vmem:[%s1316_s20 + $0x18] sm:$0xff] %v564_v50  ;;  %v565_v62 = vmul.f32 %v1232_v43, %v394_v27  ;;  %v400_v2 = vadd.f32 %v834_v44, %v399_v57  ;;  %843 = vpow2.f32 %v1230_v42  ;;  %v729_v43 = vmul.f32 -1.442695, %v252_v36 }
  0x60   : > { %v838_v41 = vpop.eup %837  ;;  %845 = vtanh.f32 %v216_v59  ;;  %vm416_vm8 = vweird.f32 %v1313_v40  ;;  %v420_v42 = vand.u32 2147483647, %v1313_v40  ;;  %v422_v8 = vand.u32 2147483648, %v1313_v40 }
  0x61   : > { %581 = vst [vmem:[%s1316_s20 + $0x20] sm:$0xff] %v565_v62  ;;  %v404_v60 = vsel %vm1357_vm6, %v834_v44, %v400_v2  ;;  %v412_v5 = vmul.f32 %v838_v41, %v1313_v40  ;;  %847 = vrcp.f32 %v1361_v3  ;;  %vm417_vm9 = vweird.f32 %v838_v41 }
  0x62   : > { %v409_v7 = vsel %vm406_vm7, %v408_v0, %v404_v60  ;;  %849 = vtanh.f32 %v217_v4  ;;  %v840_v9 = vpop.eup %839  ;;  %vm1386_vm10 = vmor %vm416_vm8, %vm417_vm9  ;;  %v423_v23 = vor.u32 1.1754944e-38, %v422_v8  ;;  %v730_v24 = vmul.f32 -1.442695, %v253_v12 }
  0x63   : > { %v566_v10 = vmul.f32 %v1255_v58, %v409_v7  ;;  %v413_v11 = vsub.f32 1.0, %v412_v5  ;;  %851 = vpow2.f32 %v728_v1  ;;  %v842_v14 = vpop.eup %841  ;;  %v1377_v16 = vadd.f32 1.0, %v840_v9 }
  0x64   : > { %853 = vtanh.f32 %v218_v6  ;;  %v731_v25 = vmul.f32 -1.442695, %v254_v13  ;;  %vm1391_vm11 = vcmp.eq.f32.partialorder %v420_v42, 8.507059e+37  ;;  %v435_v33 = vand.u32 2147483647, %v1361_v3 }
  0x65   : > { %v844_v18 = vpop.eup %843  ;;  %582 = vst [vmem:[%s1316_s20 + $0x28] sm:$0xff] %v566_v10  ;;  %v414_v19 = vmul.f32 %v838_v41, %v413_v11  ;;  %855 = vpow2.f32 %v729_v43  ;;  %v437_v34 = vand.u32 2147483648, %v1361_v3  ;;  %vm431_vm12 = vweird.f32 %v1361_v3 }
  0x66   : > { %v1382_v22 = vpop.eup %845  ;;  %857 = vrcp.f32 %v1377_v16  ;;  %v1395_v30 = vadd.f32 1.0, %v844_v18  ;;  %v452_v15 = vand.u32 2147483648, %v1377_v16  ;;  %v1416_v49 = vmul.f32 -1.442695, %v255_v35 }
  0x67   : > { %v848_v26 = vpop.eup %847  ;;  %v415_v28 = vadd.f32 %v838_v41, %v414_v19  ;;  %859 = vtanh.f32 %v219_v17  ;;  %v1418_v51 = vmul.f32 -1.442695, %v256_v37  ;;  %vm1420_vm14 = vcmp.eq.f32.partialorder %v435_v33, 8.507059e+37 }
  0x68   : > { %v1397_v31 = vpop.eup %849  ;;  %v427_v32 = vmul.f32 %v848_v26, %v1361_v3  ;;  %861 = vtanh.f32 %v220_v20  ;;  %vm432_vm13 = vweird.f32 %v848_v26  ;;  %v438_v54 = vor.u32 1.1754944e-38, %v437_v34  ;;  %v224_v20 = vld [vmem:[%s1172_s14 + $0x78] sm:$0xff] }
  0x69   : > { %v852_v40 = vpop.eup %851  ;;  %v419_v44 = vsel %vm1386_vm10, %v838_v41, %v415_v28  ;;  %863 = vrcp.f32 %v1395_v30  ;;  %vm1431_vm15 = vmor %vm431_vm12, %vm432_vm13  ;;  %vm446_vm0 = vweird.f32 %v1377_v16  ;;  %v450_v57 = vand.u32 2147483647, %v1377_v16 }
  0x6a   : > { %v1409_v38 = vpop.eup %853  ;;  %v424_v21 = vsel %vm1391_vm11, %v423_v23, %v419_v44  ;;  %v428_v45 = vsub.f32 1.0, %v427_v32  ;;  %v1413_v46 = vadd.f32 1.0, %v852_v40  ;;  %865 = vpow2.f32 %v730_v24 }
  0x6b   : > { %v856_v39 = vpop.eup %855  ;;  %v567_v48 = vmul.f32 %v842_v14, %v424_v21  ;;  %v453_v61 = vor.u32 1.1754944e-38, %v452_v15  ;;  %vm461_vm2 = vweird.f32 %v1395_v30  ;;  %v465_v1 = vand.u32 2147483647, %v1395_v30 }
  0x6c   : > { %v858_v50 = vpop.eup %857  ;;  %v429_v52 = vmul.f32 %v848_v26, %v428_v45  ;;  %867 = vrcp.f32 %v1413_v46  ;;  %v1441_v62 = vadd.f32 1.0, %v856_v39  ;;  %v467_v4 = vand.u32 2147483648, %v1395_v30 }
  0x6d   : > { %v1425_v55 = vpop.eup %859  ;;  %583 = vst [vmem:[%s1316_s20 + $0x30] sm:$0xff] %v567_v48  ;;  %v442_v27 = vmul.f32 %v858_v50, %v1377_v16  ;;  %869 = vtanh.f32 %v221_v47  ;;  %vm447_vm1 = vweird.f32 %v858_v50  ;;  %v480_v5 = vand.u32 2147483647, %v1413_v46 }
  0x6e   : > { %v1438_v59 = vpop.eup %861  ;;  %v430_v36 = vadd.f32 %v848_v26, %v429_v52  ;;  %871 = vpow2.f32 %v731_v25  ;;  %v482_v6 = vand.u32 2147483648, %v1413_v46  ;;  %vm1456_vm3 = vmor %vm446_vm0, %vm447_vm1  ;;  %vm451_vm5 = vcmp.eq.f32.partialorder %v450_v57, 8.507059e+37  ;;  %v222_v52 = vld [vmem:[%s1172_s14 + $0x68] sm:$0xff] }
  0x6f   : > { %v864_v63 = vpop.eup %863  ;;  %v443_v0 = vsub.f32 1.0, %v442_v27  ;;  %873 = vrcp.f32 %v1441_v62  ;;  %vm1464_vm6 = vcmp.eq.f32.partialorder %v465_v1, 8.507059e+37  ;;  %v468_v17 = vor.u32 1.1754944e-38, %v467_v4 }
  0x70   : > { %v434_v2 = vsel %vm1431_vm15, %v848_v26, %v430_v36  ;;  %v457_v3 = vmul.f32 %v864_v63, %v1395_v30  ;;  %v866_v41 = vpop.eup %865  ;;  %vm462_vm4 = vweird.f32 %v864_v63  ;;  %vm476_vm7 = vweird.f32 %v1413_v46 }
  0x71   : > { %v439_v43 = vsel %vm1420_vm14, %v438_v54, %v434_v2  ;;  %v444_v60 = vmul.f32 %v858_v50, %v443_v0  ;;  %v1460_v10 = vadd.f32 1.0, %v866_v41  ;;  %vm1476_vm8 = vmor %vm461_vm2, %vm462_vm4  ;;  %vm1480_vm10 = vcmp.eq.f32.partialorder %v480_v5, 8.507059e+37 }
  0x72   : > { %v868_v7 = vpop.eup %867  ;;  %v568_v42 = vmul.f32 %v1382_v22, %v439_v43  ;;  %v458_v9 = vsub.f32 1.0, %v457_v3  ;;  %v483_v26 = vor.u32 1.1754944e-38, %v482_v6  ;;  %v495_v33 = vand.u32 2147483647, %v1441_v62 }
  0x73   : > { %v1462_v11 = vpop.eup %869  ;;  %v445_v12 = vadd.f32 %v858_v50, %v444_v60  ;;  %v472_v14 = vmul.f32 %v868_v7, %v1413_v46  ;;  %875 = vrcp.f32 %v1460_v10  ;;  %vm477_vm9 = vweird.f32 %v868_v7 }
  0x74   : > { %584 = vst [vmem:[%s1316_s20 + $0x38] sm:$0xff] %v568_v42  ;;  %v459_v16 = vmul.f32 %v864_v63, %v458_v9  ;;  %v872_v18 = vpop.eup %871  ;;  %vm1493_vm11 = vmor %vm476_vm7, %vm477_vm9  ;;  %vm491_vm12 = vweird.f32 %v1441_v62  ;;  %v497_v37 = vand.u32 2147483648, %v1441_v62  ;;  %v510_v45 = vand.u32 2147483647, %v1460_v10 }
  0x75   : > { %v449_v19 = vsel %vm1456_vm3, %v858_v50, %v445_v12  ;;  %v473_v22 = vsub.f32 1.0, %v472_v14  ;;  %v874_v23 = vpop.eup %873  ;;  %v1484_v28 = vadd.f32 1.0, %v872_v18  ;;  %v512_v46 = vand.u32 2147483648, %v1460_v10  ;;  %v223_v14 = vld [vmem:[%s1172_s14 + $0x70] sm:$0xff] }
  0x76   : > { %v454_v24 = vsel %vm451_vm5, %v453_v61, %v449_v19  ;;  %v460_v25 = vadd.f32 %v864_v63, %v459_v16  ;;  %v487_v32 = vmul.f32 %v874_v23, %v1441_v62  ;;  %vm492_vm13 = vweird.f32 %v874_v23 }
  0x77   : > { %v569_v29 = vmul.f32 %v1397_v31, %v454_v24  ;;  %v474_v30 = vmul.f32 %v868_v7, %v473_v22  ;;  %877 = vrcp.f32 %v1484_v28  ;;  %vm1509_vm14 = vcmp.eq.f32.partialorder %v495_v33, 8.507059e+37  ;;  %vm1520_vm15 = vmor %vm491_vm12, %vm492_vm13 }
  0x78   : > { %v464_v34 = vsel %vm1476_vm8, %v864_v63, %v460_v25  ;;  %v488_v44 = vsub.f32 1.0, %v487_v32  ;;  %879 = vpow2.f32 %v1416_v49  ;;  %v498_v53 = vor.u32 1.1754944e-38, %v497_v37 }
  0x79   : > { %585 = vst [vmem:[%s1316_s20 + $0x40] sm:$0xff] %v569_v29  ;;  %v469_v31 = vsel %vm1464_vm6, %v468_v17, %v464_v34  ;;  %v475_v40 = vadd.f32 %v868_v7, %v474_v30  ;;  %v876_v15 = vpop.eup %875  ;;  %vm506_vm0 = vweird.f32 %v1460_v10  ;;  %881 = vpow2.f32 %v1418_v51 }
  0x7a   : > { %v570_v21 = vmul.f32 %v1409_v38, %v469_v31  ;;  %v489_v39 = vmul.f32 %v874_v23, %v488_v44  ;;  %v502_v50 = vmul.f32 %v876_v15, %v1460_v10  ;;  %vm507_vm2 = vweird.f32 %v876_v15 }
  0x7b   : > { %v479_v47 = vsel %vm1493_vm11, %v868_v7, %v475_v40  ;;  %vm1527_vm1 = vcmp.eq.f32.partialorder %v510_v45, 8.507059e+37  ;;  %v513_v61 = vor.u32 1.1754944e-38, %v512_v46  ;;  %883 = vtanh.f32 %v222_v52  ;;  %vm508_vm4 = vmor %vm506_vm0, %vm507_vm2 }
  0x7c   : > { %586 = vst [vmem:[%s1316_s20 + $0x48] sm:$0xff] %v570_v21  ;;  %v484_v38 = vsel %vm1480_vm10, %v483_v26, %v479_v47  ;;  %v490_v56 = vadd.f32 %v874_v23, %v489_v39  ;;  %v503_v27 = vsub.f32 1.0, %v502_v50  ;;  %vm521_vm3 = vweird.f32 %v1484_v28 }
  0x7d   : > { %v571_v54 = vmul.f32 %v1425_v55, %v484_v38  ;;  %v878_v57 = vpop.eup %877  ;;  %v525_v1 = vand.u32 2147483647, %v1484_v28  ;;  %v527_v2 = vand.u32 2147483648, %v1484_v28 }
  0x7e   : > { %v494_v62 = vsel %vm1520_vm15, %v874_v23, %v490_v56  ;;  %v504_v63 = vmul.f32 %v876_v15, %v503_v27  ;;  %v517_v0 = vmul.f32 %v878_v57, %v1484_v28  ;;  %v880_v55 = vpop.eup %879  ;;  %vm522_vm5 = vweird.f32 %v878_v57 }
  0x7f   : > { %587 = vst [vmem:[%s1316_s20 + $0x50] sm:$0xff] %v571_v54  ;;  %v499_v51 = vsel %vm1509_vm14, %v498_v53, %v494_v62  ;;  %v319_v43 = vadd.f32 1.0, %v880_v55  ;;  %v882_v60 = vpop.eup %881  ;;  %vm523_vm6 = vmor %vm521_vm3, %vm522_vm5  ;;  %v528_v8 = vor.u32 1.1754944e-38, %v527_v2  ;;  %vm526_vm7 = vcmp.eq.f32.partialorder %v525_v1, 8.507059e+37 }
  0x80   : > { %v572_v3 = vmul.f32 %v1438_v59, %v499_v51  ;;  %v505_v4 = vadd.f32 %v876_v15, %v504_v63  ;;  %v518_v41 = vsub.f32 1.0, %v517_v0  ;;  %v320_v59 = vadd.f32 1.0, %v882_v60 }
  0x81   : > { %885 = vrcp.f32 %v319_v43  ;;  %v884_v7 = vpop.eup %883  ;;  %v542_v19 = vand.u32 2147483648, %v319_v43  ;;  %vm536_vm8 = vweird.f32 %v319_v43 }
  0x82   : > { %588 = vst [vmem:[%s1316_s20 + $0x58] sm:$0xff] %v572_v3  ;;  %v509_v5 = vsel %vm508_vm4, %v876_v15, %v505_v4  ;;  %v519_v6 = vmul.f32 %v878_v57, %v518_v41  ;;  %887 = vrcp.f32 %v320_v59  ;;  %v557_v26 = vand.u32 2147483648, %v320_v59 }
  0x83   : > { %v514_v42 = vsel %vm1527_vm1, %v513_v61, %v509_v5  ;;  %889 = vtanh.f32 %v223_v14  ;;  %v543_v25 = vor.u32 1.1754944e-38, %v542_v19  ;;  %vm551_vm11 = vweird.f32 %v320_v59 }
  0x84   : > { %v573_v9 = vmul.f32 %v1462_v11, %v514_v42  ;;  %v520_v10 = vadd.f32 %v878_v57, %v519_v6  ;;  %v540_v11 = vand.u32 2147483647, %v319_v43  ;;  %891 = vtanh.f32 %v224_v20 }
  0x85   : > { %v555_v29 = vand.u32 2147483647, %v320_v59  ;;  %v558_v35 = vor.u32 1.1754944e-38, %v557_v26 }
  0x86   : > { %589 = vst [vmem:[%s1316_s20 + $0x60] sm:$0xff] %v573_v9  ;;  %v524_v12 = vsel %vm523_vm6, %v878_v57, %v520_v10  ;;  %vm541_vm13 = vcmp.eq.f32.partialorder %v540_v11, 8.507059e+37 }
  0x87   : > { %v529_v13 = vsel %vm526_vm7, %v528_v8, %v524_v12  ;;  %v886_v16 = vpop.eup %885  ;;  %vm556_vm15 = vcmp.eq.f32.partialorder %v555_v29, 8.507059e+37 }
  0x88   : > { %v574_v17 = vmul.f32 %v884_v7, %v529_v13  ;;  %v532_v18 = vmul.f32 %v886_v16, %v319_v43  ;;  %v888_v22 = vpop.eup %887  ;;  %vm537_vm9 = vweird.f32 %v886_v16 }
  0x89   : > { %v547_v23 = vmul.f32 %v888_v22, %v320_v59  ;;  %vm538_vm10 = vmor %vm536_vm8, %vm537_vm9  ;;  %vm552_vm12 = vweird.f32 %v888_v22  ;;  %v890_v32 = vpop.eup %889 }
  0x8a   : > { %590 = vst [vmem:[%s1316_s20 + $0x68] sm:$0xff] %v574_v17  ;;  %v533_v58 = vsub.f32 1.0, %v532_v18  ;;  %vm553_vm14 = vmor %vm551_vm11, %vm552_vm12  ;;  %v892_v40 = vpop.eup %891 }
  0x8b   : > { %v548_v28 = vsub.f32 1.0, %v547_v23 }
  0x8c   : > { %v534_v24 = vmul.f32 %v886_v16, %v533_v58 }
  0x8d   : > { %v549_v33 = vmul.f32 %v888_v22, %v548_v28 }
  0x8e   : > { %v535_v30 = vadd.f32 %v886_v16, %v534_v24 }
  0x8f   : > { %v550_v31 = vadd.f32 %v888_v22, %v549_v33 }
  0x90   : > { %v539_v34 = vsel %vm538_vm10, %v886_v16, %v535_v30 }
  0x91   : > { %v544_v37 = vsel %vm541_vm13, %v543_v25, %v539_v34  ;;  %v554_v15 = vsel %vm553_vm14, %v888_v22, %v550_v31 }
  0x92   : > { %v575_v44 = vmul.f32 %v890_v32, %v544_v37  ;;  %v559_v21 = vsel %vm556_vm15, %v558_v35, %v554_v15 }
  0x93   : > { %v576_v45 = vmul.f32 %v892_v40, %v559_v21 }
  0x94   : > { %591 = vst [vmem:[%s1316_s20 + $0x70] sm:$0xff] %v575_v44 }
  0x95   : > { %592 = vst [vmem:[%s1316_s20 + $0x78] sm:$0xff] %v576_v45 }
  0x96   : > { %980 = shalt.err (!%p977_p13)
}
  0x97   : > { %s1027_s23 = smov 128   ;;  %s1028_s7 = smov 8  }
  0x98   : > { %746 = dma.vmem_to_hbm [thread:$0]  (%p1093_p10), %s607_s13, 2048, %s609_s17, %s594_s19, %s1027_s23, %s1027_s23, %s1028_s7  }
  0x99 PF: > { %p760_p0 = scmp.ge.s32.totalorder %s1023_s12, 2  ;;  %s623_s14 = sand.u32 1, %s1011_s9  }
  0x9a   : > { %s624_s4 = scalar_lea.sflag [#allocation4], %s623_s14 }
  0x9b   : > { %p756_p4 = pnand %p760_p0, %p1097_p11 }
  0x9d   : > { %p757_p5 = pneg %p756_p4 }
  0x9f   : > { %1006 = dma.done.wait (%p757_p5), %s624_s4, 2048  }
  0xa0   : > { %1008 = vsyncadd (%p757_p5), %s624_s4, 4294965248  ;;  %p18_p7 = scmp.ge.s32.totalorder %s1069_s15, 5   ;;  %s1644_s9 = smov %s1015_s10 }
  0xa1   : > { %s1645_s10 = smov %s1019_s11  ;;  %s1646_s11 = smov %s1081_s18 }
  0xa2   : > { %s1647_s12 = smov %s1069_s15  ;;  %20 = sbr.rel (!%p18_p7) target bundleno = 7 (0x7), region = 86 }
  0xa7   :  { %630 = vsyncpa [#allocation3], 1 }
  0xa8   :  { %632 = vsyncpa [#allocation3 + $0x1], 1 }
  0xa9   :  { %633 = vsyncpa [#allocation6], 1 }
  0xaa   :  { %635 = vsyncpa [#allocation6 + $0x1], 1 }
  0xab   :  { %636 = vsyncpa [#allocation4], 1 }
  0xac   :  { %638 = vsyncpa [#allocation4 + $0x1], 1 }

</bundles_post_ra>
